<compile_context>
chip_gen: v7x
topology: tpu7x:2x2x1
jax: 0.10.0
libtpu: 0.0.40
codegen_flags: <defaults>
</compile_context>

<pallas_src>
import jax
import jax.numpy as jnp
from jax.experimental import pallas as pl
from jax.experimental.pallas import tpu as pltpu


def _cdiv(a, b):
    return -(-a // b)


def _round_up(x, m):
    return _cdiv(x, m) * m


def _round_down(x, m):
    return (x // m) * m


def _vmem_capacity_bytes():
    # Per-core VMEM: 128 MiB on v5e/v6e, 64 MiB on v7x.  Fall back to the
    # smallest (v7x) budget if the query is unavailable.
    try:
        return int(pltpu.get_tpu_info().vmem_capacity_bytes)
    except Exception:
        return 64 << 20


def _pixel_attention_kernel(x_ref, w_ref, b_ref, o_ref):
    # x_ref/o_ref: (Nb, C, T)  activations; spatial positions on the lane axis
    # w_ref:       (C, C)      conv weight W[o, i] (native PyTorch layout)
    # b_ref:       (C, 1)      conv bias, broadcast over lanes
    x = x_ref[...]
    w = w_ref[...]
    b = b_ref[...]
    nb, c, _ = x.shape

    if c <= 8:
        # Tiny channel count: unrolled VPU channel mix.  A (C,C)@(C,T) matmul
        # with C << 128 would use a sliver of the MXU and still pay MXU
        # push/pop latency; the VALU form avoids that entirely.
        xf = x.astype(jnp.float32)
        y = jnp.zeros(x.shape, jnp.float32) + b[None]            # (Nb, C, T)
        for i in range(c):
            y = y + w[:, i][None, :, None] * xf[:, i, :][:, None, :]
    else:
        # MXU path: batched channel-mixing matmul, f32 accumulation.
        # Broadcasting W keeps the result directly in (Nb, C, T) order,
        # so there is no in-kernel transpose / relayout.
        wb = jnp.broadcast_to(w, (nb, c, c))
        y = jnp.einsum("boc,bct->bot", wb, x,
                       preferred_element_type=jnp.float32) + b[None]

    att = jax.nn.sigmoid(y)                                      # f32 (EUP)
    o_ref[...] = (x.astype(jnp.float32) * att).astype(o_ref.dtype)


def pixel_attention(x_nchw, weight, bias):
    """PixelAttention forward: x * sigmoid(Conv1x1(x)).

    x_nchw: (N, C, H, W); weight: (C, C) == conv.weight[:, :, 0, 0]; bias: (C,).
    """
    N, C, H, W = x_nchw.shape
    HW = H * W
    x3 = x_nchw.reshape(N, C, HW)            # free reshape: H*W contiguous per channel
    bias2d = bias.reshape(C, 1)

    itemsize = jnp.dtype(x3.dtype).itemsize
    param_bytes = (C * C + C) * jnp.dtype(weight.dtype).itemsize

    # ---- per-generation tile budget -----------------------------------------
    cap = _vmem_capacity_bytes()
    budget = cap * 3 // 4                                   # headroom vs physical/scoped VMEM
    # 4 activation buffers (double-buffered in + out) + params must fit.
    max_tile_bytes = max((budget - 2 * param_bytes - (2 << 20)) // 4, 1 << 20)
    # Multi-MiB DMA bursts; bigger parts (128 MiB VMEM, v5e/v6e) get bigger tiles.
    target_tile_bytes = min((16 << 20) if cap >= (96 << 20) else (8 << 20),
                            max_tile_bytes)

    lane_bytes = C * itemsize                                # bytes per spatial lane of a tile
    max_lanes = max(target_tile_bytes // lane_bytes, 128)

    if HW <= max_lanes:
        # Whole image fits in one spatial tile; fold batch elements per grid
        # step to reach MiB-scale DMA bursts on small feature maps.
        t_hw = HW                     # full dim -> (8,128) rule satisfied for any HW
        n_s = 1
        img_bytes = max(C * HW * itemsize, 1)
        nb = max(1, min(N, target_tile_bytes // img_bytes))
        # Keep >= 2 grid steps when possible (megacore + compute/DMA overlap).
        if nb > 1 and _cdiv(N, nb) < 2:
            nb = _cdiv(N, 2)
        if N == 1 and n_s == 1 and HW >= 256:
            # Single-image, single-tile degenerate grid: split spatially instead.
            t_hw = _round_up(_cdiv(HW, 2), 128)
            n_s = _cdiv(HW, t_hw)
    else:
        # Tile spatially with lane-dense tiles (multiple of 128; 256 alignment
        # once the MXU is actually exercised).  The last tile may be partial:
        # Pallas masks the tail store, and tail-lane garbage cannot leak into
        # valid lanes because the matmul only contracts over channels.
        nb = 1
        align = 256 if C >= 128 else 128
        t_hw = max(_round_down(max_lanes, align), align)
        n_s = _cdiv(HW, t_hw)

    n_b = _cdiv(N, nb)
    tile_bytes = nb * C * t_hw * itemsize
    # VMEM the kernel actually needs (never clamp the limit below this; the
    # tile was derived from the budget so `needed` <= cap by construction).
    needed = 4 * tile_bytes + 2 * param_bytes + (2 << 20)
    vmem_limit = int(min(max(needed, 16 << 20), cap))

    out3 = pl.pallas_call(
        _pixel_attention_kernel,
        out_shape=jax.ShapeDtypeStruct((N, C, HW), x3.dtype),
        grid_spec=pltpu.PrefetchScalarGridSpec(
            num_scalar_prefetch=0,
            grid=(n_b, n_s),
            in_specs=[
                pl.BlockSpec((nb, C, t_hw), lambda b, s: (b, 0, s)),  # activations
                pl.BlockSpec((C, C), lambda b, s: (0, 0)),            # weight (resident)
                pl.BlockSpec((C, 1), lambda b, s: (0, 0)),            # bias   (resident)
            ],
            out_specs=pl.BlockSpec((nb, C, t_hw), lambda b, s: (b, 0, s)),
        ),
        compiler_params=pltpu.CompilerParams(
            dimension_semantics=("parallel", "parallel"),
            vmem_limit_bytes=vmem_limit,
        ),
    )(x3, weight, bias2d)

    return out3.reshape(N, C, H, W)


def pixel_attention_ref(x_nchw, weight, bias):
    # Exact-f32 reference (broadcast-multiply-sum; no MXU) of the PyTorch forward.
    y = jnp.sum(weight[None, :, :, None, None] * x_nchw[:, None, :, :, :], axis=2)
    y = y + bias[None, :, None, None]
    return x_nchw * jax.nn.sigmoid(y)


if __name__ == "__main__":
    key = jax.random.PRNGKey(0)

    def run_case(case_key, N, C, H, W, atol, rtol):
        kx, kw, kb = jax.random.split(case_key, 3)
        x = jax.random.normal(kx, (N, C, H, W), dtype=jnp.float32)
        # Deterministic init mimicking nn.Conv2d(C, C, kernel_size=1) shapes:
        # weight (C, C, 1, 1) -> (C, C); bias (C,)
        bound = 1.0 / (C ** 0.5)
        weight = jax.random.uniform(kw, (C, C), jnp.float32, -bound, bound)
        bias = jax.random.uniform(kb, (C,), jnp.float32, -bound, bound)

        out = jax.block_until_ready(pixel_attention(x, weight, bias))
        ref = pixel_attention_ref(x, weight, bias)
        assert out.shape == (N, C, H, W)
        assert jnp.allclose(out, ref, atol=atol, rtol=rtol), \
            f"mismatch vs reference for shape {(N, C, H, W)}"

    k1, k2 = jax.random.split(key)
    # Spec-sized example: tiny C -> unrolled VPU path (exact f32, tight tol).
    run_case(k1, 2, 4, 16, 16, atol=1e-5, rtol=1e-5)
    # Larger C -> batched MXU path (looser tol: MXU f32 matmuls may use a
    # multi-pass bf16 decomposition depending on TPU generation/defaults).
    run_case(k2, 2, 32, 16, 16, atol=2e-3, rtol=2e-3)

    print("KERNEL_OK")
</pallas_src>

<mosaic_0001>
module attributes {stable_mosaic.version = 11 : i64} {
  func.func @_pixel_attention_kernel(%arg0: i32, %arg1: i32, %arg2: memref<1x4x256xf32, #tpu.memory_space<vmem>>, %arg3: memref<4x4xf32, #tpu.memory_space<vmem>>, %arg4: memref<4x1xf32, #tpu.memory_space<vmem>>, %arg5: memref<1x4x256xf32, #tpu.memory_space<vmem>>) attributes {dimension_semantics = [#tpu.dimension_semantics<parallel>, #tpu.dimension_semantics<parallel>], iteration_bounds = array<i64: 2, 1>, scalar_prefetch = 0 : i64, scratch_operands = 0 : i64, tpu.core_type = #tpu.core_type<tc>, window_params = [{transform_indices = @transform_0, window_bounds = array<i64: 1, 4, 256>}, {pipeline_mode = #tpu.pipeline_mode<synchronous>, transform_indices = @transform_1, window_bounds = array<i64: 4, 4>}, {pipeline_mode = #tpu.pipeline_mode<synchronous>, transform_indices = @transform_2, window_bounds = array<i64: 4, 1>}, {transform_indices = @transform_3, window_bounds = array<i64: 1, 4, 256>}]} {
    %c0 = arith.constant 0 : index
    %c0_0 = arith.constant 0 : index
    %c0_1 = arith.constant 0 : index
    %0 = vector.load %arg2[%c0, %c0_0, %c0_1] : memref<1x4x256xf32, #tpu.memory_space<vmem>>, vector<1x4x256xf32>
    %c0_2 = arith.constant 0 : index
    %c0_3 = arith.constant 0 : index
    %1 = vector.load %arg3[%c0_2, %c0_3] : memref<4x4xf32, #tpu.memory_space<vmem>>, vector<4x4xf32>
    %c0_4 = arith.constant 0 : index
    %c0_5 = arith.constant 0 : index
    %2 = vector.load %arg4[%c0_4, %c0_5] : memref<4x1xf32, #tpu.memory_space<vmem>>, vector<4x1xf32>
    %cst = arith.constant 0.000000e+00 : f32
    %3 = vector.broadcast %cst : f32 to vector<1x4x256xf32>
    %4 = vector.shape_cast %2 : vector<4x1xf32> to vector<1x4x1xf32>
    %5 = vector.broadcast %4 : vector<1x4x1xf32> to vector<1x4x256xf32>
    %6 = arith.addf %3, %5 : vector<1x4x256xf32>
    %7 = vector.extract_strided_slice %1 {offsets = [0, 0], sizes = [4, 1], strides = [1, 1]} : vector<4x4xf32> to vector<4x1xf32>
    %8 = vector.shape_cast %7 : vector<4x1xf32> to vector<4xf32>
    %9 = vector.shape_cast %8 : vector<4xf32> to vector<1x4x1xf32>
    %10 = vector.extract_strided_slice %0 {offsets = [0, 0, 0], sizes = [1, 1, 256], strides = [1, 1, 1]} : vector<1x4x256xf32> to vector<1x1x256xf32>
    %11 = vector.shape_cast %10 : vector<1x1x256xf32> to vector<1x256xf32>
    %12 = vector.shape_cast %11 : vector<1x256xf32> to vector<1x1x256xf32>
    %13 = vector.broadcast %9 : vector<1x4x1xf32> to vector<1x4x256xf32>
    %14 = vector.broadcast %12 : vector<1x1x256xf32> to vector<1x4x256xf32>
    %15 = arith.mulf %13, %14 : vector<1x4x256xf32>
    %16 = arith.addf %6, %15 : vector<1x4x256xf32>
    %17 = vector.extract_strided_slice %1 {offsets = [0, 1], sizes = [4, 1], strides = [1, 1]} : vector<4x4xf32> to vector<4x1xf32>
    %18 = vector.shape_cast %17 : vector<4x1xf32> to vector<4xf32>
    %19 = vector.shape_cast %18 : vector<4xf32> to vector<1x4x1xf32>
    %20 = vector.extract_strided_slice %0 {offsets = [0, 1, 0], sizes = [1, 1, 256], strides = [1, 1, 1]} : vector<1x4x256xf32> to vector<1x1x256xf32>
    %21 = vector.shape_cast %20 : vector<1x1x256xf32> to vector<1x256xf32>
    %22 = vector.shape_cast %21 : vector<1x256xf32> to vector<1x1x256xf32>
    %23 = vector.broadcast %19 : vector<1x4x1xf32> to vector<1x4x256xf32>
    %24 = vector.broadcast %22 : vector<1x1x256xf32> to vector<1x4x256xf32>
    %25 = arith.mulf %23, %24 : vector<1x4x256xf32>
    %26 = arith.addf %16, %25 : vector<1x4x256xf32>
    %27 = vector.extract_strided_slice %1 {offsets = [0, 2], sizes = [4, 1], strides = [1, 1]} : vector<4x4xf32> to vector<4x1xf32>
    %28 = vector.shape_cast %27 : vector<4x1xf32> to vector<4xf32>
    %29 = vector.shape_cast %28 : vector<4xf32> to vector<1x4x1xf32>
    %30 = vector.extract_strided_slice %0 {offsets = [0, 2, 0], sizes = [1, 1, 256], strides = [1, 1, 1]} : vector<1x4x256xf32> to vector<1x1x256xf32>
    %31 = vector.shape_cast %30 : vector<1x1x256xf32> to vector<1x256xf32>
    %32 = vector.shape_cast %31 : vector<1x256xf32> to vector<1x1x256xf32>
    %33 = vector.broadcast %29 : vector<1x4x1xf32> to vector<1x4x256xf32>
    %34 = vector.broadcast %32 : vector<1x1x256xf32> to vector<1x4x256xf32>
    %35 = arith.mulf %33, %34 : vector<1x4x256xf32>
    %36 = arith.addf %26, %35 : vector<1x4x256xf32>
    %37 = vector.extract_strided_slice %1 {offsets = [0, 3], sizes = [4, 1], strides = [1, 1]} : vector<4x4xf32> to vector<4x1xf32>
    %38 = vector.shape_cast %37 : vector<4x1xf32> to vector<4xf32>
    %39 = vector.shape_cast %38 : vector<4xf32> to vector<1x4x1xf32>
    %40 = vector.extract_strided_slice %0 {offsets = [0, 3, 0], sizes = [1, 1, 256], strides = [1, 1, 1]} : vector<1x4x256xf32> to vector<1x1x256xf32>
    %41 = vector.shape_cast %40 : vector<1x1x256xf32> to vector<1x256xf32>
    %42 = vector.shape_cast %41 : vector<1x256xf32> to vector<1x1x256xf32>
    %43 = vector.broadcast %39 : vector<1x4x1xf32> to vector<1x4x256xf32>
    %44 = vector.broadcast %42 : vector<1x1x256xf32> to vector<1x4x256xf32>
    %45 = arith.mulf %43, %44 : vector<1x4x256xf32>
    %46 = arith.addf %36, %45 : vector<1x4x256xf32>
    %47 = arith.negf %46 : vector<1x4x256xf32>
    %48 = math.exp %47 : vector<1x4x256xf32>
    %cst_6 = arith.constant 1.000000e+00 : f32
    %49 = vector.broadcast %cst_6 : f32 to vector<1x4x256xf32>
    %50 = arith.addf %49, %48 : vector<1x4x256xf32>
    %51 = arith.divf %49, %50 : vector<1x4x256xf32>
    %52 = arith.mulf %0, %51 : vector<1x4x256xf32>
    %c0_7 = arith.constant 0 : index
    %c0_8 = arith.constant 0 : index
    %c0_9 = arith.constant 0 : index
    %53 = vector.load %arg5[%c0_7, %c0_8, %c0_9] : memref<1x4x256xf32, #tpu.memory_space<vmem>>, vector<1x4x256xf32>
    tpu.vector_store %arg5[%c0_7, %c0_8, %c0_9], %52 {strides = array<i32>} : memref<1x4x256xf32, #tpu.memory_space<vmem>>, vector<1x4x256xf32>,
    return
  }
  func.func @transform_0(%arg0: i32, %arg1: i32) -> (i32, i32, i32) {
    %c0_i32 = arith.constant 0 : i32
    %c0_i32_0 = arith.constant 0 : i32
    return %arg0, %c0_i32, %arg1 : i32, i32, i32
  }
  func.func @transform_1(%arg0: i32, %arg1: i32) -> (i32, i32) {
    %c0_i32 = arith.constant 0 : i32
    %c0_i32_0 = arith.constant 0 : i32
    %c0_i32_1 = arith.constant 0 : i32
    return %c0_i32, %c0_i32_0 : i32, i32
  }
  func.func @transform_2(%arg0: i32, %arg1: i32) -> (i32, i32) {
    %c0_i32 = arith.constant 0 : i32
    %c0_i32_0 = arith.constant 0 : i32
    %c0_i32_1 = arith.constant 0 : i32
    return %c0_i32, %c0_i32_0 : i32, i32
  }
  func.func @transform_3(%arg0: i32, %arg1: i32) -> (i32, i32, i32) {
    %c0_i32 = arith.constant 0 : i32
    %c0_i32_0 = arith.constant 0 : i32
    return %arg0, %c0_i32, %arg1 : i32, i32, i32
  }
}

</mosaic_0001>

<bundles_post_ra>
// kernel: tpu_custom_call.1
= control target key start
LH: loop header
LB: loop body
LE: loop exit
PB: predicated region body
PF: predicated region fallthrough
CT: control target
= control target key end

     0   :  { %8 = vsyncpa [#allocation3], 0  ;;  %s860_s0 = inlined_call_operand.hbm [shape: f32[2,4,256], index: 0, kind: input, shape index: {}]   ;;  %s861_s1 = inlined_call_operand.vmem [shape: f32[4,4], index: 1, kind: input, shape index: {}]   ;;  %s862_s2 = inlined_call_operand.vmem [shape: f32[4,1], index: 2, kind: input, shape index: {}]   ;;  %s863_s3 = inlined_call_operand.hbm [shape: f32[2,4,256], index: 3, kind: output, shape index: {}]  }
   0x1   :  { %10 = vsyncpa [#allocation3 + $0x1], 0 }
   0x2   :  { %11 = vsyncpa [#allocation4], 0 }
   0x3   :  { %13 = vsyncpa [#allocation4 + $0x1], 0  ;;  %s678_s12 = smov 0   ;;  %s680_s13 = smov 0  }
   0x4   :  { %s682_s14 = smov 0   ;;  %s684_s15 = smov 0  }
   0x5   :  { %s686_s16 = smov 0   ;;  %s688_s17 = smov 0  }
   0x6 LB: > { %s441_s18 = sadd.s32 4294967295, %s650_s17   ;;  %s442_s19 = sadd.s32 4294967294, %s650_s17   ;;  %s650_s17 = sphi %s688_s17, %s19_s17   ;;  %s646_s16 = sphi %s686_s16, %s879_s16   ;;  %s642_s15 = sphi %s684_s15, %s878_s15   ;;  %s638_s14 = sphi %s682_s14, %s877_s14   ;;  %s634_s13 = sphi %s680_s13, %s876_s13   ;;  %s630_s12 = sphi %s678_s12, %s875_s12  }
   0x7   : > { %s31_s20 = sadd.s32 1, %s646_s16  ;;  %s40_s21 = sadd.s32 1, %s638_s14 }
   0x8   : > { %p33_p0 = scmp.ge.s32.totalorder %s31_s20, 2  ;;  %p47_p1 = scmp.ne.s32.totalorder %s638_s14, %s634_s13 }
   0x9   : > { %p48_p2 = scmp.eq.s32.totalorder %s650_s17, 0  ;;  %p53_p3 = scmp.ne.s32.totalorder %s634_s13, %s630_s12 }
   0xa   : > { %s881_s20 = smov (%p33_p0, %s31_s20), 0  ;;  %p54_p5 = scmp.eq.s32.totalorder %s441_s18, 0 }
   0xb   : > { %p719_p4 = por %p48_p2, %p47_p1  ;;  %s35_s23 = ssub.s32 %s646_s16, %s881_s20 }
   0xc   : > { %p121_p6 = scmp.eq.s32.totalorder %s441_s18, 1  ;;  %p38_p7 = scmp.eq.s32.totalorder %s35_s23, 0 }
   0xd   : > { %p725_p8 = por %p54_p5, %p53_p3  ;;  %p127_p10 = scmp.eq.s32.totalorder %s442_s19, 1 }
   0xe   : > { %p729_p9 = por %p121_p6, %p47_p1  ;;  %p472_p13 = scmp.lt.s32.totalorder %s650_s17, 2 }
   0xf   : > { %s734_s26 = scalar_select %p38_p7, %s638_s14, %s40_s21  }
  0x10   : > { %s867_s25 = scalar_select %p729_p9, 1, 0 }
  0x11   : > { %p736_p11 = por %p127_p10, %p53_p3  ;;  %s153_s28 = sand.u32 1, %s638_s14  }
  0x12   : > { %s445_s29 = sshll.u32 %s153_s28, 3  ;;  %s458_s30 = sshll.u32 %s646_s16, 7 }
  0x13   : > { %s868_s27 = scalar_select %p736_p11, 1, 0 }
  0x14   : > { %s747_s6 = scalar_lea.hbm %s860_s0, %s458_s30  ;;  %s157_s7 = scalar_lea.vmem [#allocation2], %s445_s29 }
  0x15   : > { %s167_s8 = sshll.u32 %s157_s7, 4  ;;  %p753_p0 = pnand %p472_p13, %p719_p4  ;;  %s749_s8 = int_to_ptr.vmem [resolvable:$true] %s167_s8 }
  0x16   : > { %s154_s10 = scalar_lea.sflag [#allocation3], %s153_s28  ;;  %s538_s11 = scalar_lea.hbm %s747_s6, 128 }
  0x17   : > { %p539_p3 = scmp.ne.s32.totalorder %s747_s6, %s538_s11  ;;  %p540_p5 = pneg %p753_p0 }
  0x18   : > { %s543_s21 = scalar_lea.hbm %s860_s0, 256  ;;  %p544_p4 = scmp.lt.u32.totalorder %s747_s6, %s860_s0 }
  0x19   : > { %p541_p6 = pnand %p540_p5, %p539_p3  ;;  %p545_p10 = scmp.lt.u32.totalorder %s543_s21, %s538_s11 }
  0x1a   : > { %p547_p12 = scmp.lt.u32.totalorder %s538_s11, %s747_s6 }
  0x1b   : > { %p542_p7 = pneg %p541_p6  ;;  %p546_p13 = por %p545_p10, %p544_p4 }
  0x1d   : > { %p548_p1 = por %p547_p12, %p546_p13 }
  0x1f   : > { %p549_p2 = pnand %p548_p1, %p542_p7 }
  0x21   : > { %552 = shalt.err (!%p549_p2)
}
  0x22   : > { %s553_s28 = scalar_lea.vmem %s749_s8, 128  ;;  %s652_s29 = smov [#allocation2]  }
  0x23   : > { %p554_p3 = scmp.ne.s32.totalorder %s749_s8, %s553_s28  ;;  %s558_s30 = sshll.u32 %s652_s29, 4  ;;  %s559_s30 = int_to_ptr.vmem [resolvable:$false] %s558_s30 }
  0x24   : > { %s560_s4 = scalar_lea.vmem %s559_s30, 256  ;;  %p561_p9 = scmp.lt.s32.totalorder %s749_s8, %s559_s30 }
  0x25   : > { %p556_p6 = pnand %p554_p3, %p540_p5  ;;  %p562_p4 = scmp.lt.s32.totalorder %s560_s4, %s553_s28 }
  0x27   : > { %p557_p11 = pneg %p556_p6  ;;  %p563_p10 = por %p562_p4, %p561_p9 }
  0x29   : > { %p564_p12 = pnand %p563_p10, %p557_p11 }
  0x2b   : > { %567 = shalt.err (!%p564_p12)
}
  0x2c   : > { %467 = dma.hbm_to_vmem [thread:$0]  (!%p753_p0), %s747_s6, 128, %s749_s8, %s154_s10  }
  0x2d   : > { %p870_p1 = scmp.lt.s32.totalorder %s650_s17, 3  ;;  %p871_p2 = scmp.ge.s32.totalorder %s650_s17, 1 }
  0x2f   : > { %p173_p5 = pnand %p871_p2, %p870_p1 }
  0x30   : > { %s789_s5 = sand.u32 (!%p173_p5), 1, %s634_s13  }
  0x31   : > { %176 = sbr.rel (%p173_p5) target bundleno = 245 (0xf5), region = 32  ;;  %s449_s7 = sshll.u32 (!%p173_p5), %s789_s5, 3 }
  0x32   : > { %s179_s11 = scalar_lea.sflag (!%p173_p5), [#allocation3], %s789_s5  ;;  %s182_s9 = scalar_lea.vmem (!%p173_p5), [#allocation2], %s449_s7 }
  0x38   : > { %621 = dma.done.wait (%p725_p8), %s179_s11, 128  }
  0x39   : > { %623 = vsyncadd (%p725_p8), %s179_s11, 4294967168  ;;  %v653_v0 = vmov 0   ;;  %v654_v1 = vmov 1   ;;  %v208_v2 = vld [vmem:[%s861_s1] sm:$0xf]  ;;  %v655_v4 = vmov 2   ;;  %v222_v6 = vlaneseq }
  0x3a   : > { %526 = vset.pattern.permute.xlu0 %v653_v0  ;;  %527 = vset.pattern.permute.xlu1 %v654_v1  ;;  %v209_v3 = vld [vmem:[%s862_s2] sm:$0xf]  ;;  %v656_v5 = vmov 3   ;;  %s459_s24 = sshll.u32 %s642_s15, 7  ;;  %s204_s19 = scalar_lea.vmem [#allocation5], %s449_s7 }
  0x3b   : > { %218 = vperm.xlu0 %526, %v208_v2   ;;  %245 = vperm.xlu1 %527, %v208_v2   ;;  %v223_v7 = vshrl.u32 %v222_v6, 7  ;;  %v207_v10 = vld [vmem:[%s182_s9] sm:$0xff]  ;;  %s357_s21 = sshll.u32 %s204_s19, 4  ;;  %s811_s28 = scalar_lea.hbm %s863_s3, %s459_s24  ;;  %s813_s21 = int_to_ptr.vmem [resolvable:$true] %s357_s21 }
  0x3c   : > { %s341_s29 = scalar_lea.sflag [#allocation4], %s789_s5  ;;  %s568_s30 = scalar_lea.vmem %s813_s21, 128 }
  0x3d   : > { %v224_v8 = vsub.s32 0, %v223_v7  ;;  %v228_v9 = vsub.s32 4, %v223_v7  ;;  %v250_v11 = vsub.s32 1, %v223_v7  ;;  %v254_v12 = vsub.s32 5, %v223_v7  ;;  %p569_p8 = scmp.ne.s32.totalorder %s813_s21, %s568_s30  ;;  %p872_p9 = scmp.ne.s32.totalorder %s867_s25, 0 }
  0x3e   : > { %v276_v13 = vsub.s32 2, %v223_v7  ;;  %v280_v14 = vsub.s32 6, %v223_v7  ;;  %v302_v21 = vsub.s32 3, %v223_v7  ;;  %v306_v22 = vsub.s32 7, %v223_v7  ;;  %s657_s15 = smov [#allocation5]  }
  0x3f   : > { %212 = vperm.xlu0 %526, %v209_v3   ;;  %528 = vset.pattern.permute.xlu1 %v655_v4  ;;  %v225_v15 = vrot.slane %v207_v10, %v224_v8  ;;  %v229_v16 = vrot.slane %v207_v10, %v228_v9  ;;  %v251_v17 = vrot.slane %v207_v10, %v250_v11  ;;  %p570_p11 = pnand %p569_p8, %p872_p9  ;;  %s572_s4 = sshll.u32 %s657_s15, 4  ;;  %s573_s4 = int_to_ptr.vmem [resolvable:$false] %s572_s4 }
  0x40   : > { %271 = vperm.xlu1 %528, %v208_v2   ;;  %v255_v18 = vrot.slane %v207_v10, %v254_v12  ;;  %v277_v19 = vrot.slane %v207_v10, %v276_v13  ;;  %v281_v20 = vrot.slane %v207_v10, %v280_v14  ;;  %v303_v31 = vrot.slane %v207_v10, %v302_v21  ;;  %s574_s7 = scalar_lea.vmem %s573_s4, 256  ;;  %p575_p7 = scmp.lt.s32.totalorder %s813_s21, %s573_s4 }
  0x41   : > { %v235_v23 = vrot.slane %v225_v15, %v224_v8  ;;  %v239_v24 = vrot.slane %v229_v16, %v224_v8  ;;  %v261_v27 = vrot.slane %v251_v17, %v250_v11  ;;  %v307_v32 = vrot.slane %v207_v10, %v306_v22  ;;  %p571_p0 = pneg %p570_p11  ;;  %p576_p13 = scmp.lt.s32.totalorder %s574_s7, %s568_s30 }
  0x42   : > { %v265_v28 = vrot.slane %v255_v18, %v250_v11  ;;  %v287_v29 = vrot.slane %v277_v19, %v276_v13  ;;  %v291_v30 = vrot.slane %v281_v20, %v276_v13  ;;  %v313_v43 = vrot.slane %v303_v31, %v302_v21 }
  0x43   : > { %529 = vset.pattern.permute.xlu0 %v656_v5  ;;  %v317_v44 = vrot.slane %v307_v32, %v302_v21  ;;  %p577_p3 = por %p576_p13, %p575_p7 }
  0x44   : > { %297 = vperm.xlu0 %529, %v208_v2  }
  0x45   : > { %p578_p6 = pnand %p577_p3, %p571_p0 }
  0xba   : > { %v219_v25 = vpop.permute.xlu0 %218  ;;  %v246_v26 = vpop.permute.xlu1 %245 }
  0xbb   : > { %v240_v33 = vmul.f32 %v235_v23, %v219_v25  ;;  %v241_v34 = vmul.f32 %v239_v24, %v219_v25  ;;  %v266_v36 = vmul.f32 %v261_v27, %v246_v26  ;;  %v267_v37 = vmul.f32 %v265_v28, %v246_v26 }
  0xbe   : > { %v213_v35 = vpop.permute.xlu0 %212 }
  0xbf   : > { %v242_v38 = vadd.f32 %v240_v33, %v213_v35  ;;  %v243_v39 = vadd.f32 %v241_v34, %v213_v35  ;;  %v272_v40 = vpop.permute.xlu1 %271 }
  0xc0   : > { %v292_v41 = vmul.f32 %v287_v29, %v272_v40  ;;  %v293_v42 = vmul.f32 %v291_v30, %v272_v40 }
  0xc1   : > { %v268_v45 = vadd.f32 %v266_v36, %v242_v38  ;;  %v269_v46 = vadd.f32 %v267_v37, %v243_v39 }
  0xc3   : > { %v294_v47 = vadd.f32 %v292_v41, %v268_v45  ;;  %v295_v48 = vadd.f32 %v293_v42, %v269_v46  ;;  %v298_v49 = vpop.permute.xlu0 %297 }
  0xc4   : > { %v318_v50 = vmul.f32 %v313_v43, %v298_v49  ;;  %v319_v51 = vmul.f32 %v317_v44, %v298_v49 }
  0xc6   : > { %v320_v52 = vadd.f32 %v318_v50, %v294_v47  ;;  %v321_v53 = vadd.f32 %v319_v51, %v295_v48 }
  0xc8   : > { %v451_v54 = vmul.f32 -1.442695, %v320_v52  ;;  %v452_v55 = vmul.f32 -1.442695, %v321_v53 }
  0xca   : > { %530 = vpow2.f32 %v451_v54 }
  0xcb   : > { %532 = vpow2.f32 %v452_v55 }
  0xd4   : > { %v531_v56 = vpop.eup %530 }
  0xd5   : > { %v533_v57 = vpop.eup %532  ;;  %v328_v58 = vadd.f32 1.0, %v531_v56 }
  0xd6   : > { %v329_v59 = vadd.f32 1.0, %v533_v57 }
  0xd7   : > { %534 = vrcp.f32 %v328_v58 }
  0xd8   : > { %536 = vrcp.f32 %v329_v59 }
  0xe1   : > { %v535_v60 = vpop.eup %534 }
  0xe2   : > { %v537_v61 = vpop.eup %536 }
  0xe3   : > { %v336_v62 = vcombine.low %v535_v60, %v537_v61 }
  0xe5   : > { %v338_v63 = vmul.f32 %v336_v62, %v207_v10 }
  0xe7   : > { %339 = vst [vmem:[%s204_s19] sm:$0xff] %v338_v63 }
  0xe8   : > { %581 = shalt.err (!%p578_p6)
}
  0xe9   : > { %s582_s5 = scalar_lea.hbm %s811_s28, 128  ;;  %s586_s6 = scalar_lea.hbm %s863_s3, 256 }
  0xea   : > { %p583_p4 = scmp.ne.s32.totalorder %s811_s28, %s582_s5  ;;  %p587_p1 = scmp.lt.u32.totalorder %s811_s28, %s863_s3 }
  0xeb   : > { %p588_p2 = scmp.lt.u32.totalorder %s586_s6, %s582_s5  ;;  %p590_p8 = scmp.lt.u32.totalorder %s582_s5, %s811_s28 }
  0xec   : > { %p584_p10 = pnand %p583_p4, %p872_p9 }
  0xed   : > { %p589_p5 = por %p588_p2, %p587_p1 }
  0xee   : > { %p585_p12 = pneg %p584_p10 }
  0xef   : > { %p591_p11 = por %p590_p8, %p589_p5 }
  0xf1   : > { %p592_p0 = pnand %p591_p11, %p585_p12 }
  0xf3   : > { %595 = shalt.err (!%p592_p0)
}
  0xf4   : > { %462 = dma.vmem_to_hbm [thread:$0]  (%p872_p9), %s813_s21, 128, %s811_s28, %s341_s29  }
  0xf5 PF: > { %s369_s18 = sand.u32 1, %s630_s12   ;;  %p873_p7 = scmp.ne.s32.totalorder %s868_s27, 0 }
  0xf6   : > { %p874_p13 = scmp.ge.s32.totalorder %s650_s17, 2  ;;  %s370_s24 = scalar_lea.sflag [#allocation4], %s369_s18 }
  0xf8   : > { %p469_p3 = pnand %p874_p13, %p873_p7 }
  0xfa   : > { %625 = dma.done.wait (!%p469_p3), %s370_s24, 128  }
  0xfb   : > { %627 = vsyncadd (!%p469_p3), %s370_s24, 4294967168  ;;  %s19_s17 = sadd.s32 1, %s650_s17   ;;  %s875_s12 = smov %s634_s13 }
  0xfc   : > { %p16_p6 = scmp.ge.s32.totalorder %s19_s17, 4   ;;  %s876_s13 = smov %s638_s14 }
  0xfd   : > { %s877_s14 = smov %s734_s26  ;;  %s878_s15 = smov %s646_s16 }
  0xfe   : > { %s879_s16 = smov %s881_s20  ;;  %18 = sbr.rel (!%p16_p6) target bundleno = 6 (0x6), region = 77 }
 0x105   :  { %375 = vsyncpa [#allocation3], 1 }
 0x106   :  { %377 = vsyncpa [#allocation3 + $0x1], 1 }
 0x107   :  { %378 = vsyncpa [#allocation4], 1 }
 0x108   :  { %380 = vsyncpa [#allocation4 + $0x1], 1 }

</bundles_post_ra>
